<compile_context>
chip_gen: v7x
topology: tpu7x:2x2x1
jax: 0.10.0
libtpu: 0.0.40
codegen_flags: <defaults>
</compile_context>

<pallas_src>
import functools

import jax
import jax.numpy as jnp
from jax.experimental import pallas as pl
from jax.experimental.pallas import tpu as pltpu


def _round_up(v, m):
    return (v + m - 1) // m * m


def _deepnet_kernel(x_ref, adj_ref, w_ref, b_ref, o_ref, h_ref, lhs_ref):
    """One grid step == one RGCN layer + ReLU.

    x_ref   : [Np, Dp]            f32  initial node features (used at layer 0)
    adj_ref : [R*Np, Np]          bf16 relation-stacked mean-normalized adjacency (resident)
    w_ref   : [(R+1)*Dp, Dp]      bf16 this layer's packed [W_root; W_rel_0; ...] weights
    b_ref   : [1, Dp]             f32  this layer's bias
    o_ref   : [Np, Dp]            f32  output (same block every layer -> written back once)
    h_ref   : [Np, Dp]            f32  VMEM scratch: layer carry (persists across grid steps)
    lhs_ref : [Np, (R+1)*Dp]      bf16 VMEM scratch: packed LHS for the transform matmul
    """
    layer = pl.program_id(0)

    @pl.when(layer == 0)
    def _():
        h_ref[...] = x_ref[...]

    n_pad, d_pad = h_ref.shape
    num_rel = adj_ref.shape[0] // n_pad

    h = h_ref[...].astype(jnp.bfloat16)                                   # [Np, Dp]

    # (1) single aggregation matmul over all relations: sum happens later via packed K.
    m = jnp.dot(adj_ref[...], h, preferred_element_type=jnp.float32)      # [R*Np, Dp] f32

    # Pack [h | A_0 h | ... | A_{R-1} h] along lanes (static 128-aligned slices).
    lhs_ref[:, 0:d_pad] = h
    for r in range(num_rel):  # small, static -> unrolled
        lhs_ref[:, (r + 1) * d_pad:(r + 2) * d_pad] = (
            m[r * n_pad:(r + 1) * n_pad, :].astype(jnp.bfloat16))

    # (2) one long-K, lane-dense transform matmul: K = (R+1)*Dp, output Dp=128 wide.
    out = jnp.dot(lhs_ref[...], w_ref[...], preferred_element_type=jnp.float32)
    out = jnp.maximum(out + b_ref[...], 0.0)                              # bias + ReLU

    h_ref[...] = out                        # carry to next layer (stays in VMEM)
    o_ref[...] = out.astype(o_ref.dtype)    # final grid step's value is written back


def build_relation_adjacency(edge_index, edge_type, num_nodes, num_rels):
    """Dense mean-normalized per-relation adjacency: A[r, dst, src] (PyG aggr='mean')."""
    src = edge_index[0]
    dst = edge_index[1]
    a = jnp.zeros((num_rels, num_nodes, num_nodes), dtype=jnp.float32)
    a = a.at[edge_type, dst, src].add(1.0)
    deg = a.sum(axis=2, keepdims=True)  # in-degree per (relation, dst)
    a = jnp.where(deg > 0, a / jnp.maximum(deg, 1.0), 0.0)
    return a


def init_deepnet_params(key, gnn_depth, num_rels, node_emb_dim):
    """Deterministic glorot-ish init matching RGCNConv param shapes (f32, unpacked)."""
    params = []
    scale = (2.0 / (2.0 * node_emb_dim)) ** 0.5
    for _ in range(gnn_depth):
        key, k1, k2 = jax.random.split(key, 3)
        w_rel = scale * jax.random.normal(k1, (num_rels, node_emb_dim, node_emb_dim),
                                          dtype=jnp.float32)
        w_root = scale * jax.random.normal(k2, (node_emb_dim, node_emb_dim),
                                           dtype=jnp.float32)
        bias = jnp.zeros((1, node_emb_dim), dtype=jnp.float32)
        params.append((w_rel, w_root, bias))
    return params


@functools.partial(jax.jit, static_argnames=("num_nodes", "num_rels"))
def deepnet_forward(x, edge_index, edge_type, params, *, num_nodes, num_rels):
    n, d = x.shape
    n_pad = max(_round_up(n, 8), 8)          # sublane-aligned node count
    d_pad = max(_round_up(d, 128), 128)      # lane-dense feature dim
    depth = len(params)

    # --- build + pad + stack adjacency once per forward (bf16 for DMA/MXU) ---
    adj = build_relation_adjacency(edge_index, edge_type, num_nodes, num_rels)
    adj_p = jnp.zeros((num_rels, n_pad, n_pad), jnp.float32).at[:, :n, :n].set(adj)
    adj_stack = adj_p.reshape(num_rels * n_pad, n_pad).astype(jnp.bfloat16)

    # --- pack [W_root; W_rel_r...] along K, pad to Dp, one slab per layer ---
    w_layers, b_layers = [], []
    for (w_rel, w_root, bias) in params:
        w_cat = jnp.concatenate([w_root[None], w_rel], axis=0)            # [(R+1), D, D]
        w_pad = jnp.zeros((num_rels + 1, d_pad, d_pad), jnp.float32)
        w_pad = w_pad.at[:, :d, :d].set(w_cat)
        w_layers.append(w_pad.reshape((num_rels + 1) * d_pad, d_pad))
        b_pad = jnp.zeros((1, d_pad), jnp.float32).at[:, :d].set(bias.reshape(1, d))
        b_layers.append(b_pad)
    w_all = jnp.stack(w_layers).astype(jnp.bfloat16)                      # [L,(R+1)*Dp,Dp]
    b_all = jnp.stack(b_layers)                                           # [L, 1, Dp]

    x_pad = jnp.zeros((n_pad, d_pad), jnp.float32).at[:n, :d].set(x)

    out = pl.pallas_call(
        _deepnet_kernel,
        out_shape=jax.ShapeDtypeStruct((n_pad, d_pad), jnp.float32),
        grid_spec=pltpu.PrefetchScalarGridSpec(
            num_scalar_prefetch=0,
            grid=(depth,),
            in_specs=[
                pl.BlockSpec((n_pad, d_pad), lambda l: (0, 0)),                   # x (resident)
                pl.BlockSpec((num_rels * n_pad, n_pad), lambda l: (0, 0)),        # adj (resident)
                pl.BlockSpec((None, (num_rels + 1) * d_pad, d_pad),
                             lambda l: (l, 0, 0)),                                # per-layer W
                pl.BlockSpec((None, 1, d_pad), lambda l: (l, 0, 0)),              # per-layer bias
            ],
            out_specs=pl.BlockSpec((n_pad, d_pad), lambda l: (0, 0)),
            scratch_shapes=[
                pltpu.VMEM((n_pad, d_pad), jnp.float32),                          # layer carry
                pltpu.VMEM((n_pad, (num_rels + 1) * d_pad), jnp.bfloat16),        # packed LHS
            ],
        ),
        compiler_params=pltpu.CompilerParams(
            dimension_semantics=("arbitrary",),   # layers are sequentially dependent
            vmem_limit_bytes=32 * 1024 * 1024,
        ),
    )(x_pad, adj_stack, w_all, b_all)

    return out[:n, :d]


def _deepnet_reference(x, adj, params):
    """Pure-JAX f32 reference (unfused) for a loose numerical check."""
    h = x
    for (w_rel, w_root, bias) in params:
        out = h @ w_root
        for r in range(adj.shape[0]):
            out = out + adj[r] @ (h @ w_rel[r])
        h = jnp.maximum(out + bias, 0.0)
    return h


if __name__ == "__main__":
    # Small, module-consistent shapes
    NUM_NODES = 16        # graph nodes
    NODE_EMB_DIM = 32     # params.node_emb_dim
    NUM_RELS = 3          # params.num_rels
    GNN_DEPTH = 2         # params.gnn_depth
    NUM_EDGES = 40

    key = jax.random.PRNGKey(0)
    kx, ke, kt, kp = jax.random.split(key, 4)

    x = jax.random.normal(kx, (NUM_NODES, NODE_EMB_DIM), dtype=jnp.float32)
    edge_index = jax.random.randint(ke, (2, NUM_EDGES), 0, NUM_NODES, dtype=jnp.int32)
    edge_type = jax.random.randint(kt, (NUM_EDGES,), 0, NUM_RELS, dtype=jnp.int32)

    params = tuple(init_deepnet_params(kp, GNN_DEPTH, NUM_RELS, NODE_EMB_DIM))

    out = deepnet_forward(x, edge_index, edge_type, params,
                          num_nodes=NUM_NODES, num_rels=NUM_RELS)
    out = jax.block_until_ready(out)

    assert out.shape == (NUM_NODES, NODE_EMB_DIM)
    assert bool(jnp.all(jnp.isfinite(out)))

    # Loose check against a pure-JAX f32 reference (kernel uses bf16 operands).
    adj_ref = build_relation_adjacency(edge_index, edge_type, NUM_NODES, NUM_RELS)
    ref = _deepnet_reference(x, adj_ref, params)
    assert bool(jnp.allclose(out, ref, atol=0.25, rtol=0.1))

    print("KERNEL_OK")
</pallas_src>

<mosaic_0001>
module attributes {stable_mosaic.version = 11 : i64} {
  func.func @_deepnet_kernel(%arg0: i32, %arg1: memref<16x128xf32, #tpu.memory_space<vmem>>, %arg2: memref<48x16xbf16, #tpu.memory_space<vmem>>, %arg3: memref<1x512x128xbf16, #tpu.memory_space<vmem>>, %arg4: memref<1x1x128xf32, #tpu.memory_space<vmem>>, %arg5: memref<16x128xf32, #tpu.memory_space<vmem>>, %arg6: memref<16x128xf32, #tpu.memory_space<vmem>>, %arg7: memref<16x512xbf16, #tpu.memory_space<vmem>>) attributes {dimension_semantics = [#tpu.dimension_semantics<arbitrary>], iteration_bounds = array<i64: 2>, scalar_prefetch = 0 : i64, scratch_operands = 2 : i64, tpu.core_type = #tpu.core_type<tc>, window_params = [{pipeline_mode = #tpu.pipeline_mode<synchronous>, transform_indices = @transform_0, window_bounds = array<i64: 16, 128>}, {pipeline_mode = #tpu.pipeline_mode<synchronous>, transform_indices = @transform_1, window_bounds = array<i64: 48, 16>}, {transform_indices = @transform_2, window_bounds = array<i64: 1, 512, 128>}, {transform_indices = @transform_3, window_bounds = array<i64: 1, 1, 128>}, {pipeline_mode = #tpu.pipeline_mode<synchronous>, transform_indices = @transform_4, window_bounds = array<i64: 16, 128>}]} {
    %c0_i32 = arith.constant 0 : i32
    %0 = arith.cmpi eq, %arg0, %c0_i32 : i32
    %1 = arith.extui %0 : i1 to i32
    %c0_i32_0 = arith.constant 0 : i32
    %2 = arith.cmpi ne, %1, %c0_i32_0 : i32
    scf.if %2 {
      %c0_23 = arith.constant 0 : index
      %c0_24 = arith.constant 0 : index
      %29 = vector.load %arg1[%c0_23, %c0_24] : memref<16x128xf32, #tpu.memory_space<vmem>>, vector<16x128xf32>
      %c0_25 = arith.constant 0 : index
      %c0_26 = arith.constant 0 : index
      %30 = vector.load %arg6[%c0_25, %c0_26] : memref<16x128xf32, #tpu.memory_space<vmem>>, vector<16x128xf32>
      tpu.vector_store %arg6[%c0_25, %c0_26], %29 {strides = array<i32>} : memref<16x128xf32, #tpu.memory_space<vmem>>, vector<16x128xf32>,
    } else {
    }
    %c0 = arith.constant 0 : index
    %c0_1 = arith.constant 0 : index
    %3 = vector.load %arg6[%c0, %c0_1] : memref<16x128xf32, #tpu.memory_space<vmem>>, vector<16x128xf32>
    %4 = arith.truncf %3 : vector<16x128xf32> to vector<16x128xbf16>
    %c0_2 = arith.constant 0 : index
    %c0_3 = arith.constant 0 : index
    %5 = vector.load %arg2[%c0_2, %c0_3] : memref<48x16xbf16, #tpu.memory_space<vmem>>, vector<48x16xbf16>
    %cst = arith.constant dense<0.000000e+00> : vector<48x128xf32>
    %6 = tpu.matmul %5, %4, %cst {dimension_numbers = #tpu.dot_dimension_numbers<[1], [0], [0], [1], [0, 0, 1, 1], [], []>} : vector<48x16xbf16>, vector<16x128xbf16>, vector<48x128xf32> -> vector<48x128xf32>
    %c0_4 = arith.constant 0 : index
    %c0_5 = arith.constant 0 : index
    %7 = vector.load %arg7[%c0_4, %c0_5] : memref<16x512xbf16, #tpu.memory_space<vmem>>, vector<16x128xbf16>
    tpu.vector_store %arg7[%c0_4, %c0_5], %4 {strides = array<i32>} : memref<16x512xbf16, #tpu.memory_space<vmem>>, vector<16x128xbf16>,
    %8 = vector.extract_strided_slice %6 {offsets = [0, 0], sizes = [16, 128], strides = [1, 1]} : vector<48x128xf32> to vector<16x128xf32>
    %9 = arith.truncf %8 : vector<16x128xf32> to vector<16x128xbf16>
    %c0_6 = arith.constant 0 : index
    %c128 = arith.constant 128 : index
    %10 = vector.load %arg7[%c0_6, %c128] : memref<16x512xbf16, #tpu.memory_space<vmem>>, vector<16x128xbf16>
    tpu.vector_store %arg7[%c0_6, %c128], %9 {strides = array<i32>} : memref<16x512xbf16, #tpu.memory_space<vmem>>, vector<16x128xbf16>,
    %11 = vector.extract_strided_slice %6 {offsets = [16, 0], sizes = [16, 128], strides = [1, 1]} : vector<48x128xf32> to vector<16x128xf32>
    %12 = arith.truncf %11 : vector<16x128xf32> to vector<16x128xbf16>
    %c0_7 = arith.constant 0 : index
    %c256 = arith.constant 256 : index
    %13 = vector.load %arg7[%c0_7, %c256] : memref<16x512xbf16, #tpu.memory_space<vmem>>, vector<16x128xbf16>
    tpu.vector_store %arg7[%c0_7, %c256], %12 {strides = array<i32>} : memref<16x512xbf16, #tpu.memory_space<vmem>>, vector<16x128xbf16>,
    %14 = vector.extract_strided_slice %6 {offsets = [32, 0], sizes = [16, 128], strides = [1, 1]} : vector<48x128xf32> to vector<16x128xf32>
    %15 = arith.truncf %14 : vector<16x128xf32> to vector<16x128xbf16>
    %c0_8 = arith.constant 0 : index
    %c384 = arith.constant 384 : index
    %16 = vector.load %arg7[%c0_8, %c384] : memref<16x512xbf16, #tpu.memory_space<vmem>>, vector<16x128xbf16>
    tpu.vector_store %arg7[%c0_8, %c384], %15 {strides = array<i32>} : memref<16x512xbf16, #tpu.memory_space<vmem>>, vector<16x128xbf16>,
    %c0_9 = arith.constant 0 : index
    %c0_10 = arith.constant 0 : index
    %17 = vector.load %arg7[%c0_9, %c0_10] : memref<16x512xbf16, #tpu.memory_space<vmem>>, vector<16x512xbf16>
    %c0_11 = arith.constant 0 : index
    %c0_12 = arith.constant 0 : index
    %c0_13 = arith.constant 0 : index
    %18 = vector.load %arg3[%c0_11, %c0_12, %c0_13] : memref<1x512x128xbf16, #tpu.memory_space<vmem>>, vector<1x512x128xbf16>
    %19 = vector.shape_cast %18 : vector<1x512x128xbf16> to vector<512x128xbf16>
    %cst_14 = arith.constant dense<0.000000e+00> : vector<16x128xf32>
    %20 = tpu.matmul %17, %19, %cst_14 {dimension_numbers = #tpu.dot_dimension_numbers<[1], [0], [0], [1], [0, 0, 1, 1], [], []>} : vector<16x512xbf16>, vector<512x128xbf16>, vector<16x128xf32> -> vector<16x128xf32>
    %c0_15 = arith.constant 0 : index
    %c0_16 = arith.constant 0 : index
    %c0_17 = arith.constant 0 : index
    %21 = vector.load %arg4[%c0_15, %c0_16, %c0_17] : memref<1x1x128xf32, #tpu.memory_space<vmem>>, vector<1x1x128xf32>
    %22 = vector.shape_cast %21 : vector<1x1x128xf32> to vector<1x128xf32>
    %23 = vector.broadcast %22 : vector<1x128xf32> to vector<16x128xf32>
    %24 = arith.addf %20, %23 : vector<16x128xf32>
    %cst_18 = arith.constant 0.000000e+00 : f32
    %25 = vector.broadcast %cst_18 : f32 to vector<16x128xf32>
    %26 = arith.maximumf %24, %25 : vector<16x128xf32>
    %c0_19 = arith.constant 0 : index
    %c0_20 = arith.constant 0 : index
    %27 = vector.load %arg6[%c0_19, %c0_20] : memref<16x128xf32, #tpu.memory_space<vmem>>, vector<16x128xf32>
    tpu.vector_store %arg6[%c0_19, %c0_20], %26 {strides = array<i32>} : memref<16x128xf32, #tpu.memory_space<vmem>>, vector<16x128xf32>,
    %c0_21 = arith.constant 0 : index
    %c0_22 = arith.constant 0 : index
    %28 = vector.load %arg5[%c0_21, %c0_22] : memref<16x128xf32, #tpu.memory_space<vmem>>, vector<16x128xf32>
    tpu.vector_store %arg5[%c0_21, %c0_22], %26 {strides = array<i32>} : memref<16x128xf32, #tpu.memory_space<vmem>>, vector<16x128xf32>,
    return
  }
  func.func @transform_0(%arg0: i32) -> (i32, i32) {
    %c0_i32 = arith.constant 0 : i32
    %c0_i32_0 = arith.constant 0 : i32
    %c0_i32_1 = arith.constant 0 : i32
    return %c0_i32, %c0_i32_0 : i32, i32
  }
  func.func @transform_1(%arg0: i32) -> (i32, i32) {
    %c0_i32 = arith.constant 0 : i32
    %c0_i32_0 = arith.constant 0 : i32
    %c0_i32_1 = arith.constant 0 : i32
    return %c0_i32, %c0_i32_0 : i32, i32
  }
  func.func @transform_2(%arg0: i32) -> (i32, i32, i32) {
    %c0_i32 = arith.constant 0 : i32
    %c0_i32_0 = arith.constant 0 : i32
    %c0_i32_1 = arith.constant 0 : i32
    return %arg0, %c0_i32, %c0_i32_0 : i32, i32, i32
  }
  func.func @transform_3(%arg0: i32) -> (i32, i32, i32) {
    %c0_i32 = arith.constant 0 : i32
    %c0_i32_0 = arith.constant 0 : i32
    %c0_i32_1 = arith.constant 0 : i32
    return %arg0, %c0_i32, %c0_i32_0 : i32, i32, i32
  }
  func.func @transform_4(%arg0: i32) -> (i32, i32) {
    %c0_i32 = arith.constant 0 : i32
    %c0_i32_0 = arith.constant 0 : i32
    %c0_i32_1 = arith.constant 0 : i32
    return %c0_i32, %c0_i32_0 : i32, i32
  }
}

</mosaic_0001>

<bundles_post_ra>
// kernel: deepnet_forward.1
= control target key start
LH: loop header
LB: loop body
LE: loop exit
PB: predicated region body
PF: predicated region fallthrough
CT: control target
= control target key end

     0   :  { %9 = vsyncpa [#allocation5], 0  ;;  %s952_s15 = smov 0   ;;  %s1065_s0 = inlined_call_operand.vmem [shape: f32[16,128], index: 0, kind: input, shape index: {}]   ;;  %s1066_s1 = inlined_call_operand.vmem [shape: bf16[48,16], index: 1, kind: input, shape index: {}]   ;;  %s1067_s2 = inlined_call_operand.vmem [shape: bf16[2,512,128], index: 2, kind: input, shape index: {}]   ;;  %s1068_s3 = inlined_call_operand.vmem [shape: f32[2,1,128], index: 3, kind: input, shape index: {}]   ;;  %s1069_s4 = inlined_call_operand.hbm [shape: f32[16,128], index: 4, kind: output, shape index: {}]  }
   0x1 LB: > { %s958_s16 = sadd.s32 4294967295, %s920_s15   ;;  %p720_p0 = scmp.ge.s32.totalorder %s920_s15, 1  ;;  %s920_s15 = sphi %s952_s15, %s15_s15  }
   0x2   : > { %p166_p1 = scmp.lt.s32.totalorder %s920_s15, 3 }
   0x4   : > { %p167_p2 = pnand %p720_p0, %p166_p1 }
   0x5   : > { %p190_p3 = scmp.lt.s32.totalorder (!%p167_p2), %s958_s16, 1  ;;  %p723_p4 = scmp.ne.s32.totalorder (!%p167_p2), %s958_s16, 0 }
   0x6   : > { %170 = sbr.rel (%p167_p2) target bundleno = 498 (0x1f2), region = 36 }
   0xd   : > { %s964_s17 = scalar_select %p190_p3, %s958_s16, 1 }
   0xe   : > { %202 = sbr.rel (%p723_p4) target bundleno = 21 (0x15), region = 40  ;;  %v203_v0 = vld [vmem:[%s1065_s0] sm:$0xff] (!%p723_p4)  ;;  %v204_v1 = vld [vmem:[%s1065_s0 + $0x8] sm:$0xff] (!%p723_p4) }
   0xf   : > { %s767_s18 = sshll.u32 %s964_s17, 8  ;;  %s197_s21 = scalar_lea.vmem %s1068_s3, %s964_s17  ;;  %205 = vst [vmem:[#allocation2] sm:$0xff] (!%p723_p4), %v203_v0  ;;  %206 = vst [vmem:[#allocation2 + $0x8] sm:$0xff] (!%p723_p4), %v204_v1 }
  0x10   : > { %s974_s24 = scalar_lea.vmem %s1067_s2, %s767_s18 }
  0x15 PF: > { %v922_v4 = vmov 0.0   ;;  %vm923_vm0 = vmmov 0   ;;  %v849_v6 = vld [vmem:[%s1066_s1] sm:$0xff]   ;;  %vm231_vm1 = vcmask 130048   ;;  %v854_v9 = vld [vmem:[%s974_s24 + $0x48] sm:$0xff]   ;;  %v858_v14 = vld [vmem:[%s974_s24 + $0x50] sm:$0xff]  }
  0x16   : > { %v207_v2 = vld [vmem:[#allocation2] sm:$0xff]  ;;  %v208_v3 = vld [vmem:[#allocation2 + $0x8] sm:$0xff]  ;;  %816 = vmatprep.subr.bf16.mxu0 %v922_v4  ;;  %818 = vmatprep.mubr.msk.bf16.mxu0 %vm923_vm0, %v922_v4  ;;  %v859_v15 = vld [vmem:[%s974_s24 + $0x10] sm:$0xff]   ;;  %s924_s11 = smov [#allocation4]   ;;  %p834_p5 = scmp.eq.s32.totalorder %s958_s16, 1 }
  0x17   : > { %v983_v5 = vpack.c.bf16 %v208_v3, %v207_v2  ;;  %v852_v7 = vld [vmem:[%s974_s24 + $0x40] sm:$0xff]   ;;  %v855_v10 = vld [vmem:[%s974_s24 + $0x8] sm:$0xff]   ;;  %v862_v18 = vld [vmem:[%s974_s24 + $0x58] sm:$0xff]   ;;  %s666_s12 = sshll.u32 %s924_s11, 4  ;;  %s667_s12 = int_to_ptr.vmem [resolvable:$true] %s666_s12 }
  0x18   : > { %v853_v8 = vld [vmem:[%s974_s24] sm:$0xff]   ;;  %772 = vmatprep.subr.bf16.mxu1 %v852_v7  ;;  %v850_v11 = vld [vmem:[%s1066_s1 + $0x8] sm:$0xff]   ;;  %v863_v19 = vld [vmem:[%s974_s24 + $0x18] sm:$0xff]   ;;  %s884_s13 = scalar_lea.vmem %s667_s12, 256  ;;  %p891_p9 = scmp.lt.s32.totalorder %s667_s12, %s667_s12 }
  0x19   : > { %817 = vmatpush3.bf16.msra.mxu0 %v983_v5  ;;  %773 = vmatpush3.bf16.msra.mxu1 %v853_v8  ;;  %v856_v12 = vld [vmem:[%s974_s24 + $0xc0] sm:$0xff]   ;;  %v860_v16 = vld [vmem:[%s974_s24 + $0xc8] sm:$0xff]   ;;  %v851_v20 = vld [vmem:[%s1066_s1 + $0x10] sm:$0xff]   ;;  %p885_p6 = scmp.ne.s32.totalorder %s667_s12, %s884_s13  ;;  %p892_p10 = scmp.lt.s32.totalorder %s884_s13, %s884_s13 }
  0x1a   : > { %774 = vmatprep.subr.bf16.mxu1 %v854_v9  ;;  %v857_v13 = vld [vmem:[%s974_s24 + $0x80] sm:$0xff]   ;;  %794 = vmatprep.subr.bf16.mxu0 %v856_v12  ;;  %v861_v17 = vld [vmem:[%s974_s24 + $0x88] sm:$0xff]   ;;  %v864_v21 = vld [vmem:[%s974_s24 + $0xd0] sm:$0xff]  }
  0x1b   : > { %v865_v22 = vld [vmem:[%s974_s24 + $0x90] sm:$0xff]   ;;  %v866_v23 = vld [vmem:[%s974_s24 + $0x60] sm:$0xff]   ;;  %v868_v25 = vld [vmem:[%s974_s24 + $0xd8] sm:$0xff]   ;;  %p886_p7 = pnand %p885_p6, %p834_p5  ;;  %p893_p11 = por %p892_p10, %p891_p9 }
  0x1c   : > { %819 = vmatmul.mubr.msk.bf16.vlgmr.msra.gmra.mrb[0].mxu0 %vm231_vm1, %v849_v6  ;;  %v867_v24 = vld [vmem:[%s974_s24 + $0x20] sm:$0xff]   ;;  %v869_v26 = vld [vmem:[%s974_s24 + $0x98] sm:$0xff]   ;;  %v870_v27 = vld [vmem:[%s974_s24 + $0x68] sm:$0xff]  }
  0x1d   : > { %822 = vmatprep.mubr.msk.bf16.mxu0 %vm923_vm0, %v922_v4  ;;  %775 = vmatpush3.bf16.msra.mxu1 %v855_v10  ;;  %v871_v28 = vld [vmem:[%s974_s24 + $0x28] sm:$0xff]   ;;  %v872_v29 = vld [vmem:[%s974_s24 + $0xe0] sm:$0xff]   ;;  %v874_v31 = vld [vmem:[%s974_s24 + $0x70] sm:$0xff]   ;;  %p887_p8 = pneg %p886_p7 }
  0x1e   : > { %795 = vmatpush3.bf16.msra.mxu0 %v857_v13  ;;  %776 = vmatprep.subr.bf16.mxu1 %v858_v14  ;;  %v873_v30 = vld [vmem:[%s974_s24 + $0xa0] sm:$0xff]   ;;  %v875_v32 = vld [vmem:[%s974_s24 + $0x30] sm:$0xff]   ;;  %v876_v33 = vld [vmem:[%s974_s24 + $0xe8] sm:$0xff]  }
  0x1f   : > { %796 = vmatprep.subr.bf16.mxu0 %v860_v16  ;;  %v877_v34 = vld [vmem:[%s974_s24 + $0xa8] sm:$0xff]   ;;  %v878_v35 = vld [vmem:[%s974_s24 + $0x78] sm:$0xff]   ;;  %v880_v37 = vld [vmem:[%s974_s24 + $0xf0] sm:$0xff]   ;;  %p894_p12 = pnand %p893_p11, %p887_p8 }
  0x20   : > { %v879_v36 = vld [vmem:[%s974_s24 + $0x38] sm:$0xff]   ;;  %v881_v38 = vld [vmem:[%s974_s24 + $0xb0] sm:$0xff]   ;;  %v730_v62 = vld [vmem:[%s197_s21] ss:$0 sm:$0xff] }
  0x21   : > { %777 = vmatpush3.bf16.msra.mxu1 %v859_v15  ;;  %v882_v39 = vld [vmem:[%s974_s24 + $0xf8] sm:$0xff]  }
  0x22   : > { %797 = vmatpush3.bf16.msra.mxu0 %v861_v17  ;;  %778 = vmatprep.subr.bf16.mxu1 %v862_v18  ;;  %v883_v40 = vld [vmem:[%s974_s24 + $0xb8] sm:$0xff]  }
  0x23   : > { %798 = vmatprep.subr.bf16.mxu0 %v864_v21 }
  0x24   : > { %823 = vmatmul.mubr.msk.bf16.gmra.mrb[4].mxu0 %vm231_vm1, %v850_v11 }
  0x25   : > { %826 = vmatprep.mubr.msk.bf16.mxu0 %vm923_vm0, %v922_v4  ;;  %779 = vmatpush3.bf16.msra.mxu1 %v863_v19 }
  0x26   : > { %799 = vmatpush3.bf16.msra.mxu0 %v865_v22  ;;  %780 = vmatprep.subr.bf16.mxu1 %v866_v23 }
  0x27   : > { %800 = vmatprep.subr.bf16.mxu0 %v868_v25 }
  0x29   : > { %781 = vmatpush3.bf16.msra.mxu1 %v867_v24 }
  0x2a   : > { %801 = vmatpush3.bf16.msra.mxu0 %v869_v26  ;;  %782 = vmatprep.subr.bf16.mxu1 %v870_v27 }
  0x2b   : > { %802 = vmatprep.subr.bf16.mxu0 %v872_v29 }
  0x2c   : > { %827 = vmatmul.mubr.msk.bf16.gmra.mrb[8].mxu0 %vm231_vm1, %v851_v20 }
  0x2d   : > { %783 = vmatpush3.bf16.msra.mxu1 %v871_v28 }
  0x2e   : > { %803 = vmatpush3.bf16.msra.mxu0 %v873_v30  ;;  %784 = vmatprep.subr.bf16.mxu1 %v874_v31 }
  0x2f   : > { %804 = vmatprep.subr.bf16.mxu0 %v876_v33 }
  0x31   : > { %785 = vmatpush3.bf16.msra.mxu1 %v875_v32 }
  0x32   : > { %805 = vmatpush3.bf16.msra.mxu0 %v877_v34  ;;  %786 = vmatprep.subr.bf16.mxu1 %v878_v35 }
  0x33   : > { %806 = vmatprep.subr.bf16.mxu0 %v880_v37 }
  0x35   : > { %787 = vmatpush3.bf16.msra.mxu1 %v879_v36 }
  0x36   : > { %807 = vmatpush3.bf16.msra.mxu0 %v881_v38 }
  0x37   : > { %808 = vmatprep.subr.bf16.mxu0 %v882_v39 }
  0x3a   : > { %809 = vmatpush3.bf16.msra.mxu0 %v883_v40 }
  0xef   : > { %v275_v41 = vpop.f32.mrb[0].mxu0 }
  0xf0   : > { %v820_v42 = vpop.f32.mrb[1].mxu0 }
  0xf1   : > { %v278_v43 = vpop.f32.mrb[2].mxu0 }
  0xf2   : > { %v821_v44 = vpop.f32.mrb[3].mxu0  ;;  %v299_v45 = vpack.c.bf16 %v278_v43, %v275_v41 }
  0xf4   : > { %604 = vmatprep.mubr.bf16.mxu1 %v299_v45 }
  0xf5   : > { %605 = vmatmul.mubr.bf16.vlgmr.msra.gmra.mrb[0].mxu1 %v983_v5 }
  0xf7   : > { %v283_v46 = vpop.f32.mrb[4].mxu0 }
  0xf8   : > { %v824_v47 = vpop.f32.mrb[5].mxu0 }
  0xf9   : > { %v286_v48 = vpop.f32.mrb[6].mxu0 }
  0xfa   : > { %v301_v49 = vpack.c.bf16 %v286_v48, %v283_v46  ;;  %v825_v50 = vpop.f32.mrb[7].mxu0 }
  0xff   : > { %v291_v51 = vpop.f32.mrb[8].mxu0 }
 0x100   : > { %v828_v52 = vpop.f32.mrb[9].mxu0 }
 0x101   : > { %v294_v53 = vpop.f32.mrb[10].mxu0 }
 0x102   : > { %v303_v54 = vpack.c.bf16 %v294_v53, %v291_v51  ;;  %v829_v55 = vpop.f32.mrb[11].mxu0 }
 0x104   : > { %645 = vmatprep.mubr.bf16.mxu0 %v303_v54 }
 0x105   : > { %646 = vmatmul.mubr.bf16.vlgmr.msra.gmra.mrb[12].mxu0 %v301_v49 }
 0x1c8   : > { %v788_v56 = vpop.f32.mrb[0].mxu1 }
 0x1c9   : > { %v789_v57 = vpop.f32.mrb[1].mxu1 }
 0x1ca   : > { %v790_v58 = vadd.f32 %v789_v57, %v788_v56  ;;  %v791_v59 = vpop.f32.mrb[2].mxu1 }
 0x1cb   : > { %v792_v60 = vpop.f32.mrb[3].mxu1 }
 0x1cc   : > { %v793_v61 = vadd.f32 %v792_v60, %v791_v59  ;;  %v607_v63 = vadd.f32 %v790_v58, %v730_v62 }
 0x1ce   : > { %v610_v5 = vadd.f32 %v793_v61, %v730_v62 }
 0x1d8   : > { %v810_v0 = vpop.f32.mrb[12].mxu0 }
 0x1d9   : > { %v811_v1 = vpop.f32.mrb[13].mxu0 }
 0x1da   : > { %v812_v2 = vadd.f32 %v811_v1, %v810_v0  ;;  %v813_v3 = vpop.f32.mrb[14].mxu0 }
 0x1db   : > { %v814_v4 = vpop.f32.mrb[15].mxu0 }
 0x1dc   : > { %v648_v6 = vadd.f32 %v812_v2, %v607_v63  ;;  %v815_v7 = vadd.f32 %v814_v4, %v813_v3 }
 0x1de   : > { %v654_v8 = vmax.f32 %v648_v6, 0.0  ;;  %v651_v9 = vadd.f32 %v815_v7, %v610_v5 }
 0x1e0   : > { %656 = vst [vmem:[#allocation2] sm:$0xff] %v654_v8  ;;  %658 = vst [vmem:[#allocation4] sm:$0xff] %v654_v8  ;;  %v655_v10 = vmax.f32 %v651_v9, 0.0 }
 0x1e2   : > { %657 = vst [vmem:[#allocation2 + $0x8] sm:$0xff] %v655_v10  ;;  %659 = vst [vmem:[#allocation4 + $0x8] sm:$0xff] %v655_v10 }
 0x1e3   : > { %897 = shalt.err (!%p894_p12)
}
 0x1e4   : > { %s898_s18 = scalar_lea.hbm %s1069_s4, 256 }
 0x1e5   : > { %p899_p13 = scmp.ne.s32.totalorder %s1069_s4, %s898_s18  ;;  %p904_p2 = scmp.lt.u32.totalorder %s898_s18, %s1069_s4 }
 0x1e7   : > { %p900_p0 = pnand %p899_p13, %p834_p5 }
 0x1e9   : > { %p901_p1 = pneg %p900_p0 }
 0x1eb   : > { %p906_p3 = pnand %p904_p2, %p901_p1 }
 0x1ed   : > { %909 = shalt.err (!%p906_p3)
}
 0x1ee   : > { %s925_s23 = smov 128   ;;  %s926_s24 = smov 8  }
 0x1ef   : > { %831 = dma.vmem_to_hbm [thread:$0]  (%p834_p5), %s667_s12, 256, %s1069_s4, [#allocation5], %s925_s23, %s925_s23, %s926_s24  }
 0x1f0   : > { %915 = dma.done.wait (%p834_p5), [#allocation5], 256  }
 0x1f1   : > { %917 = vsyncadd (%p834_p5), [#allocation5], 4294967040 }
 0x1f2 PF: > { %s15_s15 = sadd.s32 1, %s920_s15  }
 0x1f3   : > { %p12_p4 = scmp.ge.s32.totalorder %s15_s15, 4  }
 0x1f5   :  { %14 = sbr.rel (!%p12_p4) target bundleno = 1 (0x1), region = 70 }
 0x1fc   :  { %682 = vsyncpa [#allocation5], 1 }
 0x1fd   :  { %684 = vsyncpa [#allocation5 + $0x1], 1 }

</bundles_post_ra>
